<compile_context>
chip_gen: v7x
topology: tpu7x:2x2x1
jax: 0.10.0
libtpu: 0.0.40
codegen_flags: <defaults>
</compile_context>

<pallas_src>
import functools

import jax
import jax.numpy as jnp
from jax.experimental import pallas as pl
from jax.experimental.pallas import tpu as pltpu

LEAKY_RATE = 0.1


def _cdiv(a, b):
    return (a + b - 1) // b


def _activation(y, leaky):
    if leaky:
        # leaky_relu(y) == max(y, 0.1*y): one mul + one max (cheaper than cmp+select).
        return jnp.maximum(y, jnp.float32(LEAKY_RATE) * y)
    return jnp.maximum(y, 0.0)


def _pick_tile_l(l_out, n, bytes_per_l, resident_bytes, tile_l):
    """Lane tile along L_out.

    Multiple of 128, never larger than l_out (so blocks never exceed the array),
    sized so the double-buffered VMEM working set stays v7x-safe (~40 MiB of the
    64 MiB/TC budget), and small enough that the parallel grid has >=2 steps
    (v7x megacore) when that is possible.
    """
    if l_out <= 128:
        return l_out  # single block; block dim == full array dim (always legal)
    tl = min(int(tile_l), (l_out // 128) * 128)
    tl = max(128, (tl // 128) * 128)
    budget = max(8 * 2**20, 40 * 2**20 - resident_bytes)
    while tl > 128 and tl * bytes_per_l > budget:
        tl -= 128
    # v7x has 2 TensorCores: prefer >= 2 parallel grid steps so both get work.
    while tl > 128 and n * _cdiv(l_out, tl) < 2:
        tl = max(128, ((tl // 2) // 128) * 128)
    return tl


# --------------------------------------------------------------------------- #
# K == 1: conv == a single matmul  W(C_out, C_in) @ X(C_in, TL)  per L tile.  #
# --------------------------------------------------------------------------- #
def _conv1d_k1_kernel(x_ref, w_ref, b_ref, o_ref, *, leaky):
    # x_ref: (1, C_in, TL)   w_ref: (C_out, C_in)   b_ref: (C_out, 1) f32
    # o_ref: (1, C_out, TL)
    y = jnp.dot(w_ref[...], x_ref[0], preferred_element_type=jnp.float32)
    y = y + b_ref[...]                     # bias broadcast over lanes (L)
    o_ref[0] = _activation(y, leaky).astype(o_ref.dtype)


def _conv1d_k1(x, weight, bias_col, stride, padding, use_leaky, tile_l,
               compute_dtype, out_dtype):
    n, c_in, _ = x.shape
    c_out = weight.shape[0]

    if padding > 0:
        x = jnp.pad(x, ((0, 0), (0, 0), (padding, padding)))
    l_in = x.shape[-1]
    l_out = (l_in - 1) // stride + 1
    assert l_out > 0

    if stride > 1:
        # TODO(synk): fold stride into the kernel (strided pl.ds / strided DMA on a
        # tl*stride block) to avoid this one gather copy in HBM.
        x = x[:, :, : (l_out - 1) * stride + 1 : stride]

    if x.dtype != compute_dtype:
        # NOTE: in a real model this cast should live in the producer so it fuses;
        # here it is a standalone op only because inputs are built in-script.
        x = x.astype(compute_dtype)
    w_flat = weight.reshape(c_out, c_in).astype(compute_dtype)

    in_elem = jnp.dtype(compute_dtype).itemsize
    out_elem = jnp.dtype(out_dtype).itemsize
    resident = 2 * c_out * c_in * in_elem            # weight (Pallas double-buffers it)
    bytes_per_l = 2 * c_in * in_elem + 2 * c_out * out_elem
    tl = _pick_tile_l(l_out, n, bytes_per_l, resident, tile_l)
    num_l = _cdiv(l_out, tl)                         # ragged last block is masked

    need = (2 * c_in * tl * in_elem                  # x tile, double-buffered
            + 2 * c_out * tl * out_elem              # out tile, double-buffered
            + resident + 2 * c_out * 4)
    vmem_limit = int(min(64 * 2**20, max(32 * 2**20, 2 * need)))

    cost = pl.CostEstimate(
        flops=2 * n * c_out * c_in * l_out,
        transcendentals=0,
        bytes_accessed=(n * c_in * l_out * in_elem + c_out * c_in * in_elem
                        + 4 * c_out + n * c_out * l_out * out_elem),
    )

    return pl.pallas_call(
        functools.partial(_conv1d_k1_kernel, leaky=use_leaky),
        out_shape=jax.ShapeDtypeStruct((n, c_out, l_out), out_dtype),
        grid_spec=pltpu.PrefetchScalarGridSpec(
            num_scalar_prefetch=0,
            grid=(n, num_l),
            in_specs=[
                pl.BlockSpec((1, c_in, tl), lambda b, l: (b, 0, l)),
                pl.BlockSpec((c_out, c_in), lambda b, l: (0, 0)),   # VMEM resident
                pl.BlockSpec((c_out, 1), lambda b, l: (0, 0)),      # VMEM resident
            ],
            out_specs=pl.BlockSpec((1, c_out, tl), lambda b, l: (b, 0, l)),
        ),
        compiler_params=pltpu.CompilerParams(
            dimension_semantics=("parallel", "parallel"),
            vmem_limit_bytes=vmem_limit,
        ),
        cost_estimate=cost,
    )(x, w_flat, bias_col)


# --------------------------------------------------------------------------- #
# K > 1: no im2col.  DMA a haloed input window into VMEM and accumulate K     #
# shifted matmuls in f32.                                                     #
# --------------------------------------------------------------------------- #
def _conv1d_kgt1_kernel(x_hbm, w_ref, b_ref, o_ref, xbuf, sem, *,
                        k, stride, tl, leaky):
    # x_hbm: (N, C_in, L_pad) in HBM (ANY).  w_ref: (K, C_out, C_in) VMEM resident.
    # b_ref: (C_out, 1) f32.  o_ref: (1, C_out, TL).  xbuf: (1, C_in, WIN) VMEM.
    b = pl.program_id(0)
    lt = pl.program_id(1)
    win = (tl - 1) * stride + k
    start = lt * (tl * stride)

    # TODO(synk): double-buffer this window DMA across grid steps to overlap
    # the fetch with the previous tile's compute.
    cp = pltpu.make_async_copy(
        x_hbm.at[pl.ds(b, 1), :, pl.ds(start, win)], xbuf, sem)
    cp.start()
    cp.wait()

    xw = xbuf[0]                               # (C_in, WIN)
    span = (tl - 1) * stride + 1
    y = jnp.dot(w_ref[0], xw[:, 0:span:stride],
                preferred_element_type=jnp.float32)
    for j in range(1, k):                      # static unroll over taps
        y = y + jnp.dot(w_ref[j], xw[:, j:j + span:stride],
                        preferred_element_type=jnp.float32)
    y = y + b_ref[...]
    o_ref[0] = _activation(y, leaky).astype(o_ref.dtype)


def _conv1d_kgt1(x, weight, bias_col, stride, padding, use_leaky, tile_l,
                 compute_dtype, out_dtype):
    n, c_in, _ = x.shape
    c_out, _, k = weight.shape

    if x.dtype != compute_dtype:
        x = x.astype(compute_dtype)

    l_cur = x.shape[-1] + 2 * padding
    l_out = (l_cur - k) // stride + 1
    assert l_out > 0

    in_elem = jnp.dtype(compute_dtype).itemsize
    out_elem = jnp.dtype(out_dtype).itemsize
    resident = 2 * k * c_out * c_in * in_elem
    bytes_per_l = stride * c_in * in_elem + 2 * c_out * out_elem
    tl = _pick_tile_l(l_out, n, bytes_per_l, resident, tile_l)
    num_l = _cdiv(l_out, tl)
    win = (tl - 1) * stride + k

    # Single pad (conv padding + halo tail so every tile's window is in-bounds).
    l_need = (num_l - 1) * tl * stride + win
    pad_tail = max(0, l_need - l_cur)
    if padding > 0 or pad_tail > 0:
        x = jnp.pad(x, ((0, 0), (0, 0), (padding, padding + pad_tail)))

    w_t = jnp.transpose(weight, (2, 0, 1)).astype(compute_dtype)   # (K, C_out, C_in)

    need = (c_in * win * in_elem                 # halo window (single-buffered)
            + 2 * c_out * tl * out_elem          # out tile, double-buffered
            + resident + 2 * c_out * 4)
    vmem_limit = int(min(64 * 2**20, max(32 * 2**20, 2 * need)))

    cost = pl.CostEstimate(
        flops=2 * n * c_out * c_in * k * l_out,
        transcendentals=0,
        bytes_accessed=(n * c_in * x.shape[-1] * in_elem
                        + k * c_out * c_in * in_elem + 4 * c_out
                        + n * c_out * l_out * out_elem),
    )

    kernel = functools.partial(_conv1d_kgt1_kernel, k=k, stride=stride, tl=tl,
                               leaky=use_leaky)
    return pl.pallas_call(
        kernel,
        out_shape=jax.ShapeDtypeStruct((n, c_out, l_out), out_dtype),
        grid_spec=pltpu.PrefetchScalarGridSpec(
            num_scalar_prefetch=0,
            grid=(n, num_l),
            in_specs=[
                pl.BlockSpec(memory_space=pl.ANY),                     # x stays in HBM
                pl.BlockSpec((k, c_out, c_in), lambda b, l: (0, 0, 0)),  # resident
                pl.BlockSpec((c_out, 1), lambda b, l: (0, 0)),           # resident
            ],
            out_specs=pl.BlockSpec((1, c_out, tl), lambda b, l: (b, 0, l)),
            scratch_shapes=[
                pltpu.VMEM((1, c_in, win), compute_dtype),
                pltpu.SemaphoreType.DMA,
            ],
        ),
        compiler_params=pltpu.CompilerParams(
            dimension_semantics=("parallel", "arbitrary"),
            vmem_limit_bytes=vmem_limit,
        ),
        cost_estimate=cost,
    )(x, w_t, bias_col)


# --------------------------------------------------------------------------- #
# Public entry point: equivalent of Conv1d.forward (conv1d + no bn + act).    #
# --------------------------------------------------------------------------- #
def conv1d_forward(x, weight, bias, *, stride=1, padding=0, use_leaky=True,
                   tile_l=1024, compute_dtype=jnp.bfloat16, out_dtype=None):
    """PyTorch Conv1d module forward: F.conv1d + LeakyReLU(0.1)/ReLU (bn=False).

    compute_dtype: matmul input dtype (default bf16; accumulation is always f32).
    out_dtype: output dtype (default: x.dtype).
    """
    n, c_in, _ = x.shape
    c_out, c_in_w, k = weight.shape
    assert c_in == c_in_w
    out_dtype = x.dtype if out_dtype is None else jnp.dtype(out_dtype)
    compute_dtype = x.dtype if compute_dtype is None else jnp.dtype(compute_dtype)
    bias_col = bias.reshape(c_out, 1).astype(jnp.float32)

    if k == 1:
        return _conv1d_k1(x, weight, bias_col, stride, padding, use_leaky,
                          tile_l, compute_dtype, out_dtype)
    # TODO(synk): for k>1 with stride>1 the in-kernel tap slices use lane-strided
    # reads; validated here only for stride==1.
    return _conv1d_kgt1(x, weight, bias_col, stride, padding, use_leaky,
                        tile_l, compute_dtype, out_dtype)


if __name__ == "__main__":
    key = jax.random.PRNGKey(0)

    def ref_conv1d(x, w, b, stride, padding, leaky):
        y = jax.lax.conv_general_dilated(
            x, w, window_strides=(stride,), padding=[(padding, padding)],
            dimension_numbers=("NCH", "OIH", "NCH"))
        y = y + b[None, :, None]
        return jnp.where(y > 0, y, LEAKY_RATE * y) if leaky else jnp.maximum(y, 0.0)

    # --- Test A: module defaults (k=1, stride=1, padding=0), bf16 compute -----
    N, C_IN, C_OUT, L, K = 2, 4, 8, 16, 1
    kx, kw, kb = jax.random.split(key, 3)
    x = jax.random.normal(kx, (N, C_IN, L), dtype=jnp.float32)
    w = jax.random.normal(kw, (C_OUT, C_IN, K), dtype=jnp.float32) * 0.1
    b = jax.random.normal(kb, (C_OUT,), dtype=jnp.float32) * 0.1

    out = jax.block_until_ready(conv1d_forward(x, w, b))
    ref = ref_conv1d(x, w, b, 1, 0, True)
    assert out.shape == ref.shape
    assert jnp.allclose(out, ref, atol=2e-2, rtol=5e-2), "test A (bf16, k=1) failed"

    # --- Test B: k=1, longer L (multi L-tile + ragged last block), f32 --------
    L2 = 200
    x2 = jax.random.normal(kx, (N, C_IN, L2), dtype=jnp.float32)
    out2 = jax.block_until_ready(
        conv1d_forward(x2, w, b, compute_dtype=jnp.float32))
    ref2 = ref_conv1d(x2, w, b, 1, 0, True)
    assert out2.shape == ref2.shape
    assert jnp.allclose(out2, ref2, atol=1e-5, rtol=1e-5), "test B (f32, ragged) failed"

    # --- Test C: k=3, padding=1, stride=1 (in-kernel halo path), f32, ReLU ----
    K3 = 3
    w3 = jax.random.normal(kw, (C_OUT, C_IN, K3), dtype=jnp.float32) * 0.1
    out3 = jax.block_until_ready(
        conv1d_forward(x, w3, b, stride=1, padding=1, use_leaky=False,
                       compute_dtype=jnp.float32))
    ref3 = ref_conv1d(x, w3, b, 1, 1, False)
    assert out3.shape == ref3.shape
    assert jnp.allclose(out3, ref3, atol=1e-4, rtol=1e-4), "test C (k=3 halo) failed"

    print("KERNEL_OK")
</pallas_src>

<mosaic_0001>
module attributes {stable_mosaic.version = 11 : i64} {
  func.func @_conv1d_k1_kernel(%arg0: i32, %arg1: i32, %arg2: memref<1x4x16xbf16, #tpu.memory_space<vmem>>, %arg3: memref<8x4xbf16, #tpu.memory_space<vmem>>, %arg4: memref<8x1xf32, #tpu.memory_space<vmem>>, %arg5: memref<1x8x16xf32, #tpu.memory_space<vmem>>) attributes {dimension_semantics = [#tpu.dimension_semantics<parallel>, #tpu.dimension_semantics<parallel>], iteration_bounds = array<i64: 2, 1>, scalar_prefetch = 0 : i64, scratch_operands = 0 : i64, tpu.core_type = #tpu.core_type<tc>, window_params = [{transform_indices = @transform_0, window_bounds = array<i64: 1, 4, 16>}, {pipeline_mode = #tpu.pipeline_mode<synchronous>, transform_indices = @transform_1, window_bounds = array<i64: 8, 4>}, {pipeline_mode = #tpu.pipeline_mode<synchronous>, transform_indices = @transform_2, window_bounds = array<i64: 8, 1>}, {transform_indices = @transform_3, window_bounds = array<i64: 1, 8, 16>}]} {
    %c0 = arith.constant 0 : index
    %c0_0 = arith.constant 0 : index
    %0 = vector.load %arg3[%c0, %c0_0] : memref<8x4xbf16, #tpu.memory_space<vmem>>, vector<8x4xbf16>
    %c0_1 = arith.constant 0 : index
    %c0_2 = arith.constant 0 : index
    %c0_3 = arith.constant 0 : index
    %1 = vector.load %arg2[%c0_1, %c0_2, %c0_3] : memref<1x4x16xbf16, #tpu.memory_space<vmem>>, vector<1x4x16xbf16>
    %2 = vector.shape_cast %1 : vector<1x4x16xbf16> to vector<4x16xbf16>
    %cst = arith.constant dense<0.000000e+00> : vector<8x16xf32>
    %3 = tpu.matmul %0, %2, %cst {dimension_numbers = #tpu.dot_dimension_numbers<[1], [0], [0], [1], [0, 0, 1, 1], [], []>} : vector<8x4xbf16>, vector<4x16xbf16>, vector<8x16xf32> -> vector<8x16xf32>
    %c0_4 = arith.constant 0 : index
    %c0_5 = arith.constant 0 : index
    %4 = vector.load %arg4[%c0_4, %c0_5] : memref<8x1xf32, #tpu.memory_space<vmem>>, vector<8x1xf32>
    %5 = vector.broadcast %4 : vector<8x1xf32> to vector<8x16xf32>
    %6 = arith.addf %3, %5 : vector<8x16xf32>
    %cst_6 = arith.constant 1.000000e-01 : f32
    %7 = vector.broadcast %cst_6 : f32 to vector<8x16xf32>
    %8 = arith.mulf %7, %6 : vector<8x16xf32>
    %9 = arith.maximumf %6, %8 : vector<8x16xf32>
    %c0_7 = arith.constant 0 : index
    %c0_8 = arith.constant 0 : index
    %c0_9 = arith.constant 0 : index
    %10 = vector.load %arg5[%c0_7, %c0_8, %c0_9] : memref<1x8x16xf32, #tpu.memory_space<vmem>>, vector<1x8x16xf32>
    %11 = vector.shape_cast %10 : vector<1x8x16xf32> to vector<8x16xf32>
    %12 = vector.shape_cast %9 : vector<8x16xf32> to vector<1x8x16xf32>
    tpu.vector_store %arg5[%c0_7, %c0_8, %c0_9], %12 {strides = array<i32>} : memref<1x8x16xf32, #tpu.memory_space<vmem>>, vector<1x8x16xf32>,
    return
  }
  func.func @transform_0(%arg0: i32, %arg1: i32) -> (i32, i32, i32) {
    %c0_i32 = arith.constant 0 : i32
    %c0_i32_0 = arith.constant 0 : i32
    return %arg0, %c0_i32, %arg1 : i32, i32, i32
  }
  func.func @transform_1(%arg0: i32, %arg1: i32) -> (i32, i32) {
    %c0_i32 = arith.constant 0 : i32
    %c0_i32_0 = arith.constant 0 : i32
    %c0_i32_1 = arith.constant 0 : i32
    return %c0_i32, %c0_i32_0 : i32, i32
  }
  func.func @transform_2(%arg0: i32, %arg1: i32) -> (i32, i32) {
    %c0_i32 = arith.constant 0 : i32
    %c0_i32_0 = arith.constant 0 : i32
    %c0_i32_1 = arith.constant 0 : i32
    return %c0_i32, %c0_i32_0 : i32, i32
  }
  func.func @transform_3(%arg0: i32, %arg1: i32) -> (i32, i32, i32) {
    %c0_i32 = arith.constant 0 : i32
    %c0_i32_0 = arith.constant 0 : i32
    return %arg0, %c0_i32, %arg1 : i32, i32, i32
  }
}

</mosaic_0001>

<bundles_post_ra>
// kernel: tpu_custom_call.1
= control target key start
LH: loop header
LB: loop body
LE: loop exit
PB: predicated region body
PF: predicated region fallthrough
CT: control target
= control target key end

     0   :  { %8 = vsyncpa [#allocation3], 0  ;;  %s639_s0 = inlined_call_operand.vmem [shape: bf16[2,4,16], index: 0, kind: input, shape index: {}]   ;;  %s640_s1 = inlined_call_operand.vmem [shape: bf16[8,4], index: 1, kind: input, shape index: {}]   ;;  %s641_s2 = inlined_call_operand.vmem [shape: f32[8,1], index: 2, kind: input, shape index: {}]   ;;  %s642_s3 = inlined_call_operand.hbm [shape: f32[2,8,16], index: 3, kind: output, shape index: {}]  }
   0x1   :  { %10 = vsyncpa [#allocation3 + $0x1], 0  ;;  %s521_s12 = smov 0   ;;  %s523_s13 = smov 0  }
   0x2   :  { %s525_s14 = smov 0   ;;  %s527_s15 = smov 0  }
   0x3   :  { %s529_s16 = smov 0   ;;  %s531_s17 = smov 0  }
   0x4 LB: > { %s338_s18 = sadd.s32 4294967295, %s495_s17   ;;  %s339_s19 = sadd.s32 4294967294, %s495_s17   ;;  %s495_s17 = sphi %s531_s17, %s16_s17   ;;  %s491_s16 = sphi %s529_s16, %s649_s16   ;;  %s487_s15 = sphi %s527_s15, %s648_s15   ;;  %s483_s14 = sphi %s525_s14, %s647_s14   ;;  %s479_s13 = sphi %s523_s13, %s646_s13   ;;  %s475_s12 = sphi %s521_s12, %s645_s12  }
   0x5   : > { %s28_s20 = sadd.s32 1, %s491_s16  ;;  %s107_s21 = sadd.s32 1, %s483_s14 }
   0x6   : > { %p30_p0 = scmp.ge.s32.totalorder %s28_s20, 2  ;;  %p117_p1 = scmp.ne.s32.totalorder %s483_s14, %s479_s13 }
   0x7   : > { %p118_p2 = scmp.eq.s32.totalorder %s338_s18, 1  ;;  %p123_p3 = scmp.ne.s32.totalorder %s479_s13, %s475_s12 }
   0x8   : > { %s651_s20 = smov (%p30_p0, %s28_s20), 0  ;;  %p124_p5 = scmp.eq.s32.totalorder %s339_s19, 1 }
   0x9   : > { %p561_p4 = por %p118_p2, %p117_p1  ;;  %s102_s23 = ssub.s32 %s491_s16, %s651_s20 }
   0xa   : > { %p342_p6 = scmp.ge.s32.totalorder %s495_s17, 1  ;;  %p105_p7 = scmp.eq.s32.totalorder %s102_s23, 0 }
   0xb   : > { %p568_p8 = por %p124_p5, %p123_p3  ;;  %p158_p9 = scmp.lt.s32.totalorder %s495_s17, 3 }
   0xc   : > { %s574_s25 = scalar_select %p105_p7, %s483_s14, %s107_s21  }
   0xd   : > { %p159_p10 = pnand %p342_p6, %p158_p9 }
   0xe   : > { %p184_p11 = scmp.lt.s32.totalorder (!%p159_p10), %s487_s15, 1  ;;  %v497_v0 = vmov (!%p159_p10), 0.0   ;;  %vm498_vm0 = vmmov (!%p159_p10), 0   ;;  %v194_v1 = vld [vmem:[%s641_s2] sm:$0xff] (!%p159_p10)  ;;  %v499_v2 = vmov (!%p159_p10), 0   ;;  %vm204_vm1 = vcmask (!%p159_p10), 1041408  }
   0xf   : > { %162 = sbr.rel (%p159_p10) target bundleno = 263 (0x107), region = 32  ;;  %352 = vmatprep.subr.bf16.mxu0 (!%p159_p10), %v497_v0  ;;  %354 = vmatprep.mubr.msk.bf16.mxu0 (!%p159_p10), %vm498_vm0, %v497_v0  ;;  %v192_v5 = vld [vmem:[%s640_s1] sm:$0xf] (!%p159_p10)  ;;  %vm200_vm2 = vcmask (!%p159_p10), 31744   ;;  %s181_s8 = sand.u32 (!%p159_p10), 1, %s479_s13   ;;  %vm250_vm3 = vcmask (!%p159_p10), 130048  }
  0x10   : > { %416 = vset.pattern.permute.xlu0 (!%p159_p10), %v499_v2  ;;  %s343_s9 = sshll.u32 (!%p159_p10), %s181_s8, 3  ;;  %s347_s10 = sshll.u32 (!%p159_p10), %s487_s15, 7 }
  0x11   : > { %197 = vperm.xlu0 (!%p159_p10), %416, %v194_v1   ;;  %s183_s11 = scalar_lea.vmem (!%p159_p10), [#allocation2], %s343_s9  ;;  %s592_s23 = scalar_lea.hbm (!%p159_p10), %s642_s3, %s347_s10 }
  0x12   : > { %s267_s18 = sshll.u32 (!%p159_p10), %s183_s11, 4  ;;  %s253_s26 = scalar_lea.sflag (!%p159_p10), [#allocation3], %s181_s8  ;;  %s594_s18 = int_to_ptr.vmem [resolvable:$true] %s267_s18 }
  0x13   : > { %s417_s27 = scalar_lea.vmem (!%p159_p10), %s594_s18, 128 }
  0x14   : > { %p418_p12 = scmp.ne.s32.totalorder (!%p159_p10), %s594_s18, %s417_s27 }
  0x16   : > { %s185_s28 = scalar_select %p184_p11, %s487_s15, 1 }
  0x17   : > { %p419_p13 = pnand %p418_p12, %p561_p4  ;;  %s500_s15 = smov [#allocation2]  }
  0x18   : > { %s344_s29 = sshll.u32 %s185_s28, 1  ;;  %s421_s28 = sshll.u32 %s500_s15, 4  ;;  %s422_s28 = int_to_ptr.vmem [resolvable:$false] %s421_s28 }
  0x19   : > { %s190_s5 = scalar_lea.vmem %s639_s0, %s344_s29  ;;  %p420_p0 = pneg %p419_p13 }
  0x1a   : > { %v193_v3 = vld [vmem:[%s190_s5] sm:$0x3]  ;;  %s423_s29 = scalar_lea.vmem %s422_s28, 256  ;;  %p424_p1 = scmp.lt.s32.totalorder %s594_s18, %s422_s28 }
  0x1b   : > { %v206_v4 = vsel %vm204_vm1, %v193_v3, 0  ;;  %p425_p2 = scmp.lt.s32.totalorder %s423_s29, %s417_s27 }
  0x1c   : > { %353 = vmatpush3.bf16.msra.mxu0 %v206_v4 }
  0x1d   : > { %p426_p3 = por %p425_p2, %p424_p1 }
  0x1f   : > { %355 = vmatmul.mubr.msk.bf16.vlgmr.msra.gmra.mrb[0].mxu0 %vm200_vm2, %v192_v5  ;;  %p427_p5 = pnand %p426_p3, %p420_p0 }
  0x90   : > { %v198_v6 = vpop.permute.xlu0 %197 }
  0xf2   : > { %v242_v7 = vpop.f32.mrb[0].mxu0 }
  0xf3   : > { %v243_v8 = vadd.f32 %v242_v7, %v198_v6  ;;  %v356_v9 = vpop.f32.mrb[1].mxu0 }
  0xf4   : > { %v245_v10 = vpop.f32.mrb[2].mxu0 }
  0xf5   : > { %v248_v11 = vmul.f32 0.1, %v243_v8  ;;  %v357_v12 = vpop.f32.mrb[3].mxu0 }
  0xf7   : > { %v249_v13 = vmax.f32 %v243_v8, %v248_v11 }
  0xf9   : > { %251 = vst.msk [vmem:[%s183_s11] sm:$0xff] %vm250_vm3, %v249_v13 }
  0xfa   : > { %430 = shalt.err (!%p427_p5)
}
  0xfb   : > { %s431_s30 = scalar_lea.hbm %s592_s23, 128  ;;  %s435_s6 = scalar_lea.hbm %s642_s3, 256 }
  0xfc   : > { %p432_p6 = scmp.ne.s32.totalorder %s592_s23, %s431_s30  ;;  %p436_p10 = scmp.lt.u32.totalorder %s592_s23, %s642_s3 }
  0xfd   : > { %p437_p11 = scmp.lt.u32.totalorder %s435_s6, %s431_s30  ;;  %p439_p13 = scmp.lt.u32.totalorder %s431_s30, %s592_s23 }
  0xfe   : > { %p433_p7 = pnand %p432_p6, %p561_p4 }
  0xff   : > { %p438_p12 = por %p437_p11, %p436_p10 }
 0x100   : > { %p434_p9 = pneg %p433_p7 }
 0x101   : > { %p440_p0 = por %p439_p13, %p438_p12 }
 0x103   : > { %p441_p1 = pnand %p440_p0, %p434_p9 }
 0x105   : > { %444 = shalt.err (!%p441_p1)
}
 0x106   : > { %358 = dma.vmem_to_hbm [thread:$0]  (%p561_p4), %s594_s18, 128, %s592_s23, %s253_s26  }
 0x107 PF: > { %p364_p2 = scmp.ge.s32.totalorder %s495_s17, 2  ;;  %s279_s9 = sand.u32 1, %s475_s12  }
 0x108   : > { %s280_s10 = scalar_lea.sflag [#allocation3], %s279_s9 }
 0x109   : > { %p361_p3 = pnand %p364_p2, %p568_p8 }
 0x10b   : > { %470 = dma.done.wait (!%p361_p3), %s280_s10, 128  }
 0x10c   : > { %472 = vsyncadd (!%p361_p3), %s280_s10, 4294967168  ;;  %s16_s17 = sadd.s32 1, %s495_s17   ;;  %s645_s12 = smov %s479_s13 }
 0x10d   : > { %p13_p5 = scmp.ge.s32.totalorder %s16_s17, 4   ;;  %s646_s13 = smov %s483_s14 }
 0x10e   : > { %s647_s14 = smov %s574_s25  ;;  %s648_s15 = smov %s491_s16 }
 0x10f   : > { %s649_s16 = smov %s651_s20  ;;  %15 = sbr.rel (!%p13_p5) target bundleno = 4 (0x4), region = 67 }
 0x116   :  { %285 = vsyncpa [#allocation3], 1 }
 0x117   :  { %287 = vsyncpa [#allocation3 + $0x1], 1 }

</bundles_post_ra>
